<compile_context>
chip_gen: v6e
topology: v6e:2x2x1
jax: 0.10.0
libtpu: 0.0.40
codegen_flags: <defaults>
</compile_context>

<pallas_src>
import functools

import jax
import jax.numpy as jnp
from jax.experimental import pallas as pl
from jax.experimental.pallas import tpu as pltpu

BN_EPS = 1e-5


def _round_up(x: int, m: int) -> int:
    return ((x + m - 1) // m) * m


def classification_block_kernel(x_ref, w_ref, p_ref, o_ref, *, n_valid):
    # x_ref: (N_pad, D_in)  matmul-dtype activations, whole batch, padded rows are zero
    # w_ref: (D_in, TN)     matmul-dtype weight tile, already transposed to (K, N)
    # p_ref: (2,    TN)     f32 packed [gamma; beta] tile
    # o_ref: (N_pad, TN)    output tile (lane-dense, TN % 128 == 0)
    y = jnp.dot(x_ref[...], w_ref[...], preferred_element_type=jnp.float32)

    # BatchNorm1d (training mode), one pass over the tile:
    #  - the Linear bias is never added (it cancels exactly in y - mean);
    #  - padded batch rows of y are exactly zero, so unmasked sums over the
    #    padded tile equal the sums over the valid rows -> no masking needed.
    inv_n = 1.0 / n_valid
    s1 = jnp.sum(y, axis=0, keepdims=True)              # (1, TN)  XLU
    s2 = jnp.sum(y * y, axis=0, keepdims=True)          # (1, TN)  XLU
    mean = s1 * inv_n
    var = jnp.maximum(s2 * inv_n - mean * mean, 0.0)    # biased variance

    inv_std = jax.lax.rsqrt(var + BN_EPS)               # EUP
    scale = p_ref[0:1, :] * inv_std                     # gamma * inv_std   (1, TN)
    shift = p_ref[1:2, :] - mean * scale                # beta - mean*scale (1, TN)
    o_ref[...] = (y * scale + shift).astype(o_ref.dtype)


def classification_block(x, w, b, gamma, beta, *,
                         matmul_dtype=jnp.bfloat16, out_dtype=jnp.float32):
    """x: (N, D_in); w: (D_out, D_in) as in nn.Linear; b/gamma/beta: (D_out,).

    `b` is accepted for API parity but unused: under training-mode BatchNorm
    the Linear bias cancels exactly, so the returned tensor is unchanged.
    If downstream consumers accept it, pass out_dtype=jnp.bfloat16 to halve
    the output HBM writeback.
    """
    del b
    n, d_in = x.shape
    d_out = w.shape[0]

    mdt = jnp.dtype(matmul_dtype)
    odt = jnp.dtype(out_dtype)

    # Pad batch to the matmul-dtype sublane multiple (bf16 packs 16 rows/vreg)
    # and features to a lane multiple so every output store is lane-dense.
    sublane = {1: 32, 2: 16}.get(mdt.itemsize, 8)
    n_pad = _round_up(n, sublane)
    d_out_pad = _round_up(d_out, 128)

    # Feature tile: 128-multiple divisor of d_out_pad, capped at 512 and at
    # d_out_pad // 2 when possible so the parallel grid has >= 2 steps
    # (lets v7x use its second TensorCore; no-op on single-TC v5e/v6e).
    cap = min(512, d_out_pad // 2) if d_out_pad >= 256 else d_out_pad
    tn = (cap // 128) * 128
    while d_out_pad % tn:
        tn -= 128

    def vmem_estimate(tn_):
        return (2 * n_pad * d_in * mdt.itemsize      # x double buffer
                + 2 * d_in * tn_ * mdt.itemsize      # W tile double buffer
                + 2 * 2 * tn_ * 4                    # gamma/beta tile
                + 2 * n_pad * tn_ * odt.itemsize     # out tile double buffer
                + n_pad * tn_ * 4)                   # y f32 temporary

    # Shrink the feature tile if the whole-batch-resident layout would blow the
    # VMEM budget (v7x: 64 MiB physical; v5e: 16 MiB scoped default).
    VMEM_BUDGET = 40 * 1024 * 1024
    while tn > 128 and vmem_estimate(tn) > VMEM_BUDGET:
        tn_new = tn - 128
        while d_out_pad % tn_new:
            tn_new -= 128
        tn = tn_new
    # TODO(synk): if vmem_estimate(128) still exceeds the budget (huge N), add a
    # batch-tile grid axis accumulating per-tile sum/sumsq into a (2, TN) scratch.

    # --- wrapper-side layout prep (skipped when already aligned / cast) -----
    if n_pad != n or x.dtype != mdt:
        x_p = jnp.pad(x.astype(matmul_dtype), ((0, n_pad - n), (0, 0)))
    else:
        x_p = x

    # W stored once as (D_in, D_out_pad): MXU-native (K, N), lane-dense tiles,
    # no per-step RHS relayout inside the kernel.
    w_t = w.T.astype(matmul_dtype)
    if d_out_pad != d_out:
        w_t = jnp.pad(w_t, ((0, 0), (0, d_out_pad - d_out)))

    pad_f = (0, d_out_pad - d_out)
    params = jnp.stack(
        [jnp.pad(gamma.astype(jnp.float32), pad_f),
         jnp.pad(beta.astype(jnp.float32), pad_f)],
        axis=0,
    )  # (2, d_out_pad)

    kernel = functools.partial(classification_block_kernel, n_valid=n)

    vmem_limit = int(min(100 * 2**20, max(4 * vmem_estimate(tn), 32 * 2**20)))

    out = pl.pallas_call(
        kernel,
        out_shape=jax.ShapeDtypeStruct((n_pad, d_out_pad), out_dtype),
        grid=(d_out_pad // tn,),
        in_specs=[
            # x is grid-invariant (same block every step, fetched once).
            # TODO(synk): single-buffer it (pipeline_mode=pl.Buffered(1)) to
            # halve its VMEM footprint when VMEM headroom becomes the binding
            # constraint; left at the default here.
            pl.BlockSpec((n_pad, d_in), lambda j: (0, 0)),
            pl.BlockSpec((d_in, tn), lambda j: (0, j)),    # W.T tile (K, N)
            pl.BlockSpec((2, tn), lambda j: (0, j)),       # packed gamma/beta
        ],
        out_specs=pl.BlockSpec((n_pad, tn), lambda j: (0, j)),
        compiler_params=pltpu.CompilerParams(
            dimension_semantics=("parallel",),             # megacore on v7x
            vmem_limit_bytes=vmem_limit,
        ),
    )(x_p, w_t, params)

    if n_pad != n or d_out_pad != d_out:
        out = out[:n, :d_out]
    return out


def _reference(x, w, b, gamma, beta, matmul_dtype=jnp.float32):
    xm = x.astype(matmul_dtype).astype(jnp.float32)
    wm = w.astype(matmul_dtype).astype(jnp.float32)
    y = xm @ wm.T + b
    mean = y.mean(axis=0, keepdims=True)
    var = ((y - mean) ** 2).mean(axis=0, keepdims=True)
    return (y - mean) / jnp.sqrt(var + BN_EPS) * gamma + beta


if __name__ == "__main__":
    # Small shapes consistent with the module: batch=8, input_size=32, output_size=16.
    N, D_IN, D_OUT = 8, 32, 16

    key = jax.random.PRNGKey(0)
    kx, kw, kb = jax.random.split(key, 3)

    x = jax.random.normal(kx, (N, D_IN), dtype=jnp.float32)

    # Deterministic parameter init (nn.Linear-style uniform bound; BN gamma=1, beta=0).
    bound = 1.0 / (D_IN ** 0.5)
    w = jax.random.uniform(kw, (D_OUT, D_IN), minval=-bound, maxval=bound,
                           dtype=jnp.float32)
    b = jax.random.uniform(kb, (D_OUT,), minval=-bound, maxval=bound,
                           dtype=jnp.float32)
    gamma = jnp.ones((D_OUT,), dtype=jnp.float32)
    beta = jnp.zeros((D_OUT,), dtype=jnp.float32)

    out = classification_block(x, w, b, gamma, beta)
    out = jax.block_until_ready(out)
    assert out.shape == (N, D_OUT)
    assert bool(jnp.all(jnp.isfinite(out)))

    # Tight check against a precision-matched (bf16-rounded operands) reference.
    ref_bf16 = _reference(x, w, b, gamma, beta, matmul_dtype=jnp.bfloat16)
    assert jnp.allclose(out, ref_bf16, atol=1e-4, rtol=1e-4)

    # Looser check against the pure-f32 module semantics (bf16 MXU rounding only).
    ref_f32 = _reference(x, w, b, gamma, beta, matmul_dtype=jnp.float32)
    assert jnp.allclose(out, ref_f32, atol=5e-2, rtol=5e-2)

    print("KERNEL_OK")
</pallas_src>

<mosaic_0001>
module attributes {stable_mosaic.version = 11 : i64} {
  func.func @classification_block_kernel(%arg0: i32, %arg1: memref<16x32xbf16, #tpu.memory_space<vmem>>, %arg2: memref<32x128xbf16, #tpu.memory_space<vmem>>, %arg3: memref<2x128xf32, #tpu.memory_space<vmem>>, %arg4: memref<16x128xf32, #tpu.memory_space<vmem>>) attributes {dimension_semantics = [#tpu.dimension_semantics<parallel>], iteration_bounds = array<i64: 1>, scalar_prefetch = 0 : i64, scratch_operands = 0 : i64, tpu.core_type = #tpu.core_type<tc>, window_params = [{pipeline_mode = #tpu.pipeline_mode<synchronous>, transform_indices = @transform_0, window_bounds = array<i64: 16, 32>}, {transform_indices = @transform_1, window_bounds = array<i64: 32, 128>}, {transform_indices = @transform_2, window_bounds = array<i64: 2, 128>}, {transform_indices = @transform_3, window_bounds = array<i64: 16, 128>}]} {
    %c0 = arith.constant 0 : index
    %c0_0 = arith.constant 0 : index
    %0 = vector.load %arg1[%c0, %c0_0] : memref<16x32xbf16, #tpu.memory_space<vmem>>, vector<16x32xbf16>
    %c0_1 = arith.constant 0 : index
    %c0_2 = arith.constant 0 : index
    %1 = vector.load %arg2[%c0_1, %c0_2] : memref<32x128xbf16, #tpu.memory_space<vmem>>, vector<32x128xbf16>
    %cst = arith.constant dense<0.000000e+00> : vector<16x128xf32>
    %2 = tpu.matmul %0, %1, %cst {dimension_numbers = #tpu.dot_dimension_numbers<[1], [0], [0], [1], [0, 0, 1, 1], [], []>} : vector<16x32xbf16>, vector<32x128xbf16>, vector<16x128xf32> -> vector<16x128xf32>
    %cst_3 = arith.constant dense<0.000000e+00> : vector<128xf32>
    %3 = vector.multi_reduction <add>, %2, %cst_3 [0] : vector<16x128xf32> to vector<128xf32>
    %4 = vector.shape_cast %3 : vector<128xf32> to vector<1x128xf32>
    %5 = arith.mulf %2, %2 : vector<16x128xf32>
    %cst_4 = arith.constant dense<0.000000e+00> : vector<128xf32>
    %6 = vector.multi_reduction <add>, %5, %cst_4 [0] : vector<16x128xf32> to vector<128xf32>
    %7 = vector.shape_cast %6 : vector<128xf32> to vector<1x128xf32>
    %cst_5 = arith.constant 1.250000e-01 : f32
    %8 = vector.broadcast %cst_5 : f32 to vector<1x128xf32>
    %9 = arith.mulf %4, %8 : vector<1x128xf32>
    %cst_6 = arith.constant 1.250000e-01 : f32
    %10 = vector.broadcast %cst_6 : f32 to vector<1x128xf32>
    %11 = arith.mulf %7, %10 : vector<1x128xf32>
    %12 = arith.mulf %9, %9 : vector<1x128xf32>
    %13 = arith.subf %11, %12 : vector<1x128xf32>
    %cst_7 = arith.constant 0.000000e+00 : f32
    %14 = vector.broadcast %cst_7 : f32 to vector<1x128xf32>
    %15 = arith.maximumf %13, %14 : vector<1x128xf32>
    %cst_8 = arith.constant 9.99999974E-6 : f32
    %16 = vector.broadcast %cst_8 : f32 to vector<1x128xf32>
    %17 = arith.addf %15, %16 : vector<1x128xf32>
    %18 = math.rsqrt %17 : vector<1x128xf32>
    %c0_9 = arith.constant 0 : index
    %c0_10 = arith.constant 0 : index
    %19 = vector.load %arg3[%c0_9, %c0_10] : memref<2x128xf32, #tpu.memory_space<vmem>>, vector<1x128xf32>
    %20 = arith.mulf %19, %18 : vector<1x128xf32>
    %c1 = arith.constant 1 : index
    %c0_11 = arith.constant 0 : index
    %21 = vector.load %arg3[%c1, %c0_11] : memref<2x128xf32, #tpu.memory_space<vmem>>, vector<1x128xf32>
    %22 = arith.mulf %9, %20 : vector<1x128xf32>
    %23 = arith.subf %21, %22 : vector<1x128xf32>
    %24 = vector.broadcast %20 : vector<1x128xf32> to vector<16x128xf32>
    %25 = arith.mulf %2, %24 : vector<16x128xf32>
    %26 = vector.broadcast %23 : vector<1x128xf32> to vector<16x128xf32>
    %27 = arith.addf %25, %26 : vector<16x128xf32>
    %c0_12 = arith.constant 0 : index
    %c0_13 = arith.constant 0 : index
    %28 = vector.load %arg4[%c0_12, %c0_13] : memref<16x128xf32, #tpu.memory_space<vmem>>, vector<16x128xf32>
    tpu.vector_store %arg4[%c0_12, %c0_13], %27 {strides = array<i32>} : memref<16x128xf32, #tpu.memory_space<vmem>>, vector<16x128xf32>,
    return
  }
  func.func @transform_0(%arg0: i32) -> (i32, i32) {
    %c0_i32 = arith.constant 0 : i32
    %c0_i32_0 = arith.constant 0 : i32
    %c0_i32_1 = arith.constant 0 : i32
    return %c0_i32, %c0_i32_0 : i32, i32
  }
  func.func @transform_1(%arg0: i32) -> (i32, i32) {
    %c0_i32 = arith.constant 0 : i32
    %c0_i32_0 = arith.constant 0 : i32
    return %c0_i32, %arg0 : i32, i32
  }
  func.func @transform_2(%arg0: i32) -> (i32, i32) {
    %c0_i32 = arith.constant 0 : i32
    %c0_i32_0 = arith.constant 0 : i32
    return %c0_i32, %arg0 : i32, i32
  }
  func.func @transform_3(%arg0: i32) -> (i32, i32) {
    %c0_i32 = arith.constant 0 : i32
    %c0_i32_0 = arith.constant 0 : i32
    return %c0_i32, %arg0 : i32, i32
  }
}

</mosaic_0001>

<bundles_post_ra>
// kernel: tpu_custom_call.1
= control target key start
LH: loop header
LB: loop body
LE: loop exit
PB: predicated region body
PF: predicated region fallthrough
CT: control target
= control target key end

     0   :  { %8 = vsyncpa [#allocation3], 0  ;;  %s311_s0 = inlined_call_operand.hbm [shape: bf16[16,32], index: 0, kind: input, shape index: {}]   ;;  %s312_s1 = inlined_call_operand.hbm [shape: bf16[32,128], index: 1, kind: input, shape index: {}]   ;;  %s313_s2 = inlined_call_operand.vmem [shape: f32[2,128], index: 2, kind: input, shape index: {}]   ;;  %s314_s3 = inlined_call_operand.hbm [shape: f32[16,128], index: 3, kind: output, shape index: {}]  }
   0x1   :  { %9 = vsyncpa [#allocation6], 0 }
   0x2   :  { %10 = vsyncpa [#allocation4], 0  ;;  %s267_s12 = smov [#allocation2]  }
   0x3   :  { %s16_s13 = sshll.u32 %s267_s12, 4  ;;  %s17_s13 = int_to_ptr.vmem [resolvable:$true] %s16_s13 }
   0x4   :  { %s209_s14 = scalar_lea.vmem %s17_s13, 128  ;;  %p214_p1 = scmp.lt.s32.totalorder %s17_s13, %s17_s13 }
   0x5   :  { %p210_p0 = scmp.ne.s32.totalorder %s17_s13, %s209_s14  ;;  %p215_p2 = scmp.lt.s32.totalorder %s209_s14, %s209_s14 }
   0x7   :  { %p216_p3 = por %p215_p2, %p214_p1 }
   0x9   :  { %p217_p4 = pnand %p216_p3, %p210_p0 }
   0xb   :  { %220 = shalt.err (!%p217_p4)
}
   0xc   :  { %s268_s15 = smov 64   ;;  %s269_s16 = smov 4  }
   0xd   :  { %22 = dma.hbm_to_vmem [thread:$0]  %s311_s0, 128, %s17_s13, [#allocation3], %s268_s15, %s268_s15, %s269_s16  }
   0xe   :  { %s270_s19 = smov [#allocation5]  }
   0xf   :  { %s28_s20 = sshll.u32 %s270_s19, 4  ;;  %s29_s20 = int_to_ptr.vmem [resolvable:$true] %s28_s20 }
  0x10   :  { %s229_s21 = scalar_lea.vmem %s29_s20, 256  ;;  %p234_p6 = scmp.lt.s32.totalorder %s29_s20, %s29_s20 }
  0x11   :  { %p230_p5 = scmp.ne.s32.totalorder %s29_s20, %s229_s21  ;;  %p235_p7 = scmp.lt.s32.totalorder %s229_s21, %s229_s21 }
  0x13   :  { %p236_p8 = por %p235_p7, %p234_p6 }
  0x15   :  { %p237_p9 = pnand %p236_p8, %p230_p5 }
  0x17   :  { %240 = shalt.err (!%p237_p9)
}
  0x18   :  { %34 = dma.hbm_to_vmem [thread:$0]  %s312_s1, 256, %s29_s20, [#allocation6], %s268_s15, %s268_s15, %s269_s16  }
  0x19   :  { %261 = dma.done.wait [#allocation3], 128  }
  0x1a   :  { %262 = vsyncadd [#allocation3], 4294967168 }
  0x1b   :  { %263 = dma.done.wait [#allocation6], 256  }
  0x1c   :  { %264 = vsyncadd [#allocation6], 4294967040  ;;  %v271_v0 = vmov 0.0   ;;  %vm272_vm0 = vmmov 0   ;;  %v196_v1 = vld [vmem:[#allocation5 + $0x8] sm:$0xff]   ;;  %v197_v2 = vld [vmem:[#allocation5] sm:$0xff]   ;;  %v140_v30 = vlaneseq }
  0x1d   :  { %179 = vmatprep.subr.bf16.mxu0 %v271_v0  ;;  %183 = vmatprep.mubr.msk.bf16.mxu0 %vm272_vm0, %v271_v0  ;;  %v198_v3 = vld [vmem:[#allocation2] sm:$0xff]   ;;  %vm67_vm1 = vcmask 261120   ;;  %s273_s26 = smov [#allocation7]  }
  0x1e   :  { %180 = vmatpush3.bf16.msra.mxu0 %v196_v1  ;;  %v141_v31 = vshrl.u32 %v140_v30, 7  ;;  %v135_v32 = vld [vmem:[%s313_s2] sm:$0x1]  ;;  %v137_v36 = vld [vmem:[%s313_s2 + $0x1] sm:$0x1]  ;;  %s159_s27 = sshll.u32 %s273_s26, 4  ;;  %s160_s27 = int_to_ptr.vmem [resolvable:$true] %s159_s27 }
  0x1f   :  { %181 = vmatprep.subr.bf16.mxu0 %v271_v0  ;;  %s241_s28 = scalar_lea.vmem %s160_s27, 256  ;;  %p246_p11 = scmp.lt.s32.totalorder %s160_s27, %s160_s27 }
  0x20   :  { %v142_v33 = vsub.s32 0, %v141_v31  ;;  %p242_p10 = scmp.ne.s32.totalorder %s160_s27, %s241_s28  ;;  %p247_p12 = scmp.lt.s32.totalorder %s241_s28, %s241_s28 }
  0x22   :  { %182 = vmatpush3.bf16.msra.mxu0 %v197_v2  ;;  %p248_p13 = por %p247_p12, %p246_p11 }
  0x24   :  { %p249_p0 = pnand %p248_p13, %p242_p10 }
  0x25   :  { %184 = vmatmul.mubr.msk.bf16.vlgmr.msra.gmra.mxu0 %vm67_vm1, %v198_v3 }
  0xe5   :  { %v105_v4 = vpop.f32.mrf.mxu0 }
  0xe6   :  { %v119_v7 = vmul.f32 %v105_v4, %v105_v4 }
  0xe7   :  { %v185_v5 = vpop.f32.mrf.mxu0 }
  0xe9   :  { %v108_v6 = vpop.f32.mrf.mxu0 }
  0xea   :  { %v112_v8 = vadd.f32 %v108_v6, %v105_v4  ;;  %v120_v9 = vmul.f32 %v108_v6, %v108_v6 }
  0xeb   :  { %v186_v10 = vpop.f32.mrf.mxu0 }
  0xec   :  { %v113_v11 = vrot.slane %v112_v8, 4  ;;  %v121_v12 = vadd.f32 %v120_v9, %v119_v7 }
  0xee   :  { %v114_v13 = vadd.f32 %v113_v11, %v112_v8  ;;  %v122_v14 = vrot.slane %v121_v12, 4 }
  0xf0   :  { %v115_v15 = vrot.slane %v114_v13, 2  ;;  %v123_v16 = vadd.f32 %v122_v14, %v121_v12 }
  0xf2   :  { %v116_v17 = vadd.f32 %v115_v15, %v114_v13  ;;  %v124_v18 = vrot.slane %v123_v16, 2 }
  0xf4   :  { %v117_v19 = vrot.slane %v116_v17, 1  ;;  %v125_v20 = vadd.f32 %v124_v18, %v123_v16 }
  0xf6   :  { %v118_v21 = vadd.f32 %v117_v19, %v116_v17  ;;  %v126_v22 = vrot.slane %v125_v20, 1 }
  0xf8   :  { %v127_v23 = vadd.f32 %v126_v22, %v125_v20  ;;  %v128_v24 = vmul.f32 0.125, %v118_v21 }
  0xfa   :  { %v129_v25 = vmul.f32 0.125, %v127_v23  ;;  %v130_v26 = vmul.f32 %v128_v24, %v128_v24 }
  0xfc   :  { %v131_v27 = vsub.f32 %v129_v25, %v130_v26 }
  0xfe   :  { %v132_v28 = vmax.f32 %v131_v27, 0.0 }
 0x100   :  { %v133_v29 = vadd.f32 1e-05, %v132_v28 }
 0x102   :  { %199 = vrsqrt.f32 %v133_v29 }
 0x10f   :  { %v200_v34 = vpop.eup %199 }
 0x110   :  { %v136_v35 = vmul.f32 %v200_v34, %v135_v32 }
 0x112   :  { %v138_v37 = vmul.f32 %v136_v35, %v128_v24  ;;  %v143_v38 = vrot.slane %v136_v35, %v142_v33 }
 0x114   :  { %v139_v39 = vsub.f32 %v137_v36, %v138_v37  ;;  %v144_v40 = vmul.f32 %v143_v38, %v105_v4  ;;  %v145_v41 = vmul.f32 %v143_v38, %v108_v6 }
 0x116   :  { %v149_v42 = vrot.slane %v139_v39, %v142_v33 }
 0x118   :  { %v150_v43 = vadd.f32 %v149_v42, %v144_v40  ;;  %v151_v44 = vadd.f32 %v149_v42, %v145_v41 }
 0x11a   :  { %153 = vst [vmem:[#allocation7 + $0x8] sm:$0xff] %v151_v44  ;;  %152 = vst [vmem:[#allocation7] sm:$0xff] %v150_v43 }
 0x11b   :  { %252 = shalt.err (!%p249_p0)
}
 0x11c   :  { %s274_s2 = smov 128   ;;  %s275_s29 = smov 8  }
 0x11d   :  { %165 = dma.vmem_to_hbm [thread:$0]  %s160_s27, 256, %s314_s3, [#allocation4], %s274_s2, %s274_s2, %s275_s29  }
 0x11e   :  { %265 = dma.done.wait [#allocation4], 256  }
 0x11f   :  { %266 = vsyncadd [#allocation4], 4294967040 }
 0x120   :  { %169 = vsyncpa [#allocation3], 1 }
 0x121   :  { %170 = vsyncpa [#allocation6], 1 }
 0x122   :  { %171 = vsyncpa [#allocation4], 1 }

</bundles_post_ra>
